<compile_context>
chip_gen: v6e
topology: v6e:2x2x1
jax: 0.10.0
libtpu: 0.0.40
codegen_flags: <defaults>
</compile_context>

<pallas_src>
import jax
import jax.numpy as jnp
from jax.experimental import pallas as pl
from jax.experimental.pallas import tpu as pltpu


def attention_kernel(x_ref, w1t_ref, w2t_ref, shift_ref, o_ref):
    # x_ref:     (Bb, C, N)  block of batch elements (native dtype)
    # w1t_ref:   (C, Cq)     first 1x1 conv weight (BN scale pre-folded), transposed
    # w2t_ref:   (Cq, C)     second 1x1 conv weight, transposed
    # shift_ref: (1, Cq)     folded BN shift = beta - mean * gamma / sqrt(var + eps)
    xf = x_ref[...].astype(jnp.float32)                      # (Bb, C, N) f32 working copy

    # att[b, c] = sum_j (x x^T)[b, c, j] = sum_n x[b, c, n] * s[b, n],
    # with s[b, n] = sum_c x[b, c, n]   (gram matmul eliminated algebraically).
    s = jnp.sum(xf, axis=1, keepdims=True)                   # (Bb, 1, N)  sublane reduce
    att = jnp.sum(xf * s, axis=2)                            # (Bb, C)     VPU mul + lane reduce

    # Tiny "trans" MLP as two batched MXU matmuls (MXU is otherwise idle here).
    h = jnp.dot(att, w1t_ref[...], preferred_element_type=jnp.float32,
                precision=jax.lax.Precision.HIGHEST)          # (Bb, Cq)
    h = jnp.maximum(h + shift_ref[...], 0.0)                  # BN shift + ReLU
    a = jnp.dot(h, w2t_ref[...], preferred_element_type=jnp.float32,
                precision=jax.lax.Precision.HIGHEST)          # (Bb, C)
    a = jax.nn.sigmoid(a)

    # y * att, broadcast over N; multiply in f32, single cast to output dtype.
    o_ref[...] = (xf * a[:, :, None]).astype(o_ref.dtype)


def _vmem_limits():
    """Per-generation scoped-VMEM limit and block budget (bytes)."""
    try:
        cap = int(pltpu.get_tpu_info().vmem_capacity_bytes)
    except Exception:
        cap = 64 << 20  # conservative fallback (v7x per-TC size; safe everywhere)
    # ~3/4 of physical VMEM, capped at 96 MiB:
    #   v5e/v6e (128 MiB physical) -> 96 MiB, v7x (64 MiB physical) -> 48 MiB.
    vmem_limit = min((cap * 3) // 4, 96 << 20)
    # Leave headroom for weights / compiler-internal scratch.
    block_budget = max(4 << 20, vmem_limit - (8 << 20))
    return vmem_limit, block_budget


def _choose_batch_block(B, C, N, itemsize, block_budget_bytes, min_steps=4):
    """Batch-block size Bb: fits the VMEM budget AND yields >= min(B, min_steps) grid steps."""
    # Per batch element in the working set:
    #   2x double-buffered input block + 2x output block (streaming, native dtype)
    #   + ~2 full f32 intermediate slabs inside the body (xf and one product temp).
    per_b = 4 * C * N * itemsize + 2 * C * N * 4
    bb_vmem = max(1, block_budget_bytes // per_b)
    # Enforce a minimum number of grid steps so DMA/compute overlap and (v7x)
    # both TensorCores get work; Bb need not divide B (partial last block).
    target_steps = min(B, min_steps)
    bb_steps = pl.cdiv(B, target_steps)
    return int(max(1, min(B, bb_vmem, bb_steps)))


def attention_forward(x, w1, w2, gamma, beta, running_mean, running_var, eps=1e-5):
    B, C, N = x.shape
    Cq = w1.shape[0]
    assert w1.shape == (Cq, C) and w2.shape == (C, Cq)

    # Fold BatchNorm (inference) into the first conv weight + a per-channel shift.
    scale = (gamma / jnp.sqrt(running_var + eps)).astype(jnp.float32)          # (Cq,)
    w1t = (scale[:, None] * w1.astype(jnp.float32)).T                          # (C, Cq)
    w2t = w2.astype(jnp.float32).T                                             # (Cq, C)
    shift = (beta - running_mean * scale).reshape(1, Cq).astype(jnp.float32)   # (1, Cq)

    itemsize = jnp.dtype(x.dtype).itemsize
    vmem_limit, block_budget = _vmem_limits()
    Bb = _choose_batch_block(B, C, N, itemsize, block_budget)
    grid = (pl.cdiv(B, Bb),)

    # Mem-bound cost: stream x in and out once; FLOPs ~ the reductions + multiplies + tiny MLP.
    cost = pl.CostEstimate(
        flops=4 * B * C * N + 4 * B * C * Cq,
        transcendentals=B * C,  # sigmoid
        bytes_accessed=2 * B * C * N * itemsize
        + 4 * (w1t.size + w2t.size + shift.size),
    )

    return pl.pallas_call(
        attention_kernel,
        out_shape=jax.ShapeDtypeStruct((B, C, N), x.dtype),
        grid_spec=pltpu.PrefetchScalarGridSpec(
            num_scalar_prefetch=0,
            grid=grid,
            in_specs=[
                pl.BlockSpec((Bb, C, N), lambda b: (b, 0, 0)),
                pl.BlockSpec((C, Cq), lambda b: (0, 0)),
                pl.BlockSpec((Cq, C), lambda b: (0, 0)),
                pl.BlockSpec((1, Cq), lambda b: (0, 0)),
            ],
            out_specs=pl.BlockSpec((Bb, C, N), lambda b: (b, 0, 0)),
        ),
        compiler_params=pltpu.CompilerParams(
            dimension_semantics=("parallel",),
            vmem_limit_bytes=vmem_limit,
        ),
        cost_estimate=cost,
    )(x, w1t, w2t, shift)


def attention_reference(x, w1, w2, gamma, beta, running_mean, running_var, eps=1e-5):
    # Pure-JAX reference replicating the PyTorch forward (BN in eval mode, ReLU act).
    hi = jax.lax.Precision.HIGHEST
    att = jnp.einsum("bcn,bdn->bcd", x, x, precision=hi)          # bmm(x, x^T)
    att = jnp.sum(att, axis=-1, keepdims=True)                    # (B, C, 1)
    h = jnp.einsum("oc,bcl->bol", w1, att, precision=hi)          # 1x1 conv
    h = (h - running_mean[None, :, None]) / jnp.sqrt(running_var[None, :, None] + eps)
    h = h * gamma[None, :, None] + beta[None, :, None]
    h = jnp.maximum(h, 0.0)
    a = jnp.einsum("oc,bcl->bol", w2, h, precision=hi)            # 1x1 conv
    a = jax.nn.sigmoid(a)
    return x * a


if __name__ == "__main__":
    B, C, N = 2, 32, 128
    Cq = C // 4

    key = jax.random.PRNGKey(0)
    kx, k1, k2, kg, kb, km, kv = jax.random.split(key, 7)

    x = jax.random.normal(kx, (B, C, N), dtype=jnp.float32)
    w1 = jax.random.normal(k1, (Cq, C), dtype=jnp.float32) * 0.1
    w2 = jax.random.normal(k2, (C, Cq), dtype=jnp.float32) * 0.1
    gamma = 1.0 + 0.1 * jax.random.normal(kg, (Cq,), dtype=jnp.float32)
    beta = 0.1 * jax.random.normal(kb, (Cq,), dtype=jnp.float32)
    running_mean = 0.1 * jax.random.normal(km, (Cq,), dtype=jnp.float32)
    running_var = jnp.abs(1.0 + 0.1 * jax.random.normal(kv, (Cq,), dtype=jnp.float32))

    out = attention_forward(x, w1, w2, gamma, beta, running_mean, running_var)
    out = jax.block_until_ready(out)

    ref = attention_reference(x, w1, w2, gamma, beta, running_mean, running_var)
    assert out.shape == (B, C, N)
    max_err = float(jnp.max(jnp.abs(out - ref)))
    assert jnp.allclose(out, ref, atol=2e-3, rtol=2e-3), f"mismatch vs reference (max abs err {max_err})"

    print("KERNEL_OK")
</pallas_src>

<mosaic_0001>
module attributes {stable_mosaic.version = 11 : i64} {
  func.func @attention_kernel(%arg0: i32, %arg1: memref<1x32x128xf32, #tpu.memory_space<vmem>>, %arg2: memref<32x8xf32, #tpu.memory_space<vmem>>, %arg3: memref<8x32xf32, #tpu.memory_space<vmem>>, %arg4: memref<1x8xf32, #tpu.memory_space<vmem>>, %arg5: memref<1x32x128xf32, #tpu.memory_space<vmem>>) attributes {dimension_semantics = [#tpu.dimension_semantics<parallel>], iteration_bounds = array<i64: 2>, scalar_prefetch = 0 : i64, scratch_operands = 0 : i64, tpu.core_type = #tpu.core_type<tc>, window_params = [{transform_indices = @transform_0, window_bounds = array<i64: 1, 32, 128>}, {pipeline_mode = #tpu.pipeline_mode<synchronous>, transform_indices = @transform_1, window_bounds = array<i64: 32, 8>}, {pipeline_mode = #tpu.pipeline_mode<synchronous>, transform_indices = @transform_2, window_bounds = array<i64: 8, 32>}, {pipeline_mode = #tpu.pipeline_mode<synchronous>, transform_indices = @transform_3, window_bounds = array<i64: 1, 8>}, {transform_indices = @transform_4, window_bounds = array<i64: 1, 32, 128>}]} {
    %c0 = arith.constant 0 : index
    %c0_0 = arith.constant 0 : index
    %c0_1 = arith.constant 0 : index
    %0 = vector.load %arg1[%c0, %c0_0, %c0_1] : memref<1x32x128xf32, #tpu.memory_space<vmem>>, vector<1x32x128xf32>
    %cst = arith.constant dense<0.000000e+00> : vector<1x128xf32>
    %1 = vector.multi_reduction <add>, %0, %cst [1] : vector<1x32x128xf32> to vector<1x128xf32>
    %2 = vector.shape_cast %1 : vector<1x128xf32> to vector<1x1x128xf32>
    %3 = vector.broadcast %2 : vector<1x1x128xf32> to vector<1x32x128xf32>
    %4 = arith.mulf %0, %3 : vector<1x32x128xf32>
    %cst_2 = arith.constant dense<0.000000e+00> : vector<1x32xf32>
    %5 = vector.multi_reduction <add>, %4, %cst_2 [2] : vector<1x32x128xf32> to vector<1x32xf32>
    %c0_3 = arith.constant 0 : index
    %c0_4 = arith.constant 0 : index
    %6 = vector.load %arg2[%c0_3, %c0_4] : memref<32x8xf32, #tpu.memory_space<vmem>>, vector<32x8xf32>
    %cst_5 = arith.constant dense<0.000000e+00> : vector<1x8xf32>
    %7 = tpu.matmul %5, %6, %cst_5 {dimension_numbers = #tpu.dot_dimension_numbers<[1], [0], [0], [1], [0, 0, 1, 1], [], []>, precision = #tpu.contract_precision<fp32>} : vector<1x32xf32>, vector<32x8xf32>, vector<1x8xf32> -> vector<1x8xf32>
    %c0_6 = arith.constant 0 : index
    %c0_7 = arith.constant 0 : index
    %8 = vector.load %arg4[%c0_6, %c0_7] : memref<1x8xf32, #tpu.memory_space<vmem>>, vector<1x8xf32>
    %9 = arith.addf %7, %8 : vector<1x8xf32>
    %cst_8 = arith.constant 0.000000e+00 : f32
    %10 = vector.broadcast %cst_8 : f32 to vector<1x8xf32>
    %11 = arith.maximumf %9, %10 : vector<1x8xf32>
    %c0_9 = arith.constant 0 : index
    %c0_10 = arith.constant 0 : index
    %12 = vector.load %arg3[%c0_9, %c0_10] : memref<8x32xf32, #tpu.memory_space<vmem>>, vector<8x32xf32>
    %cst_11 = arith.constant dense<0.000000e+00> : vector<1x32xf32>
    %13 = tpu.matmul %11, %12, %cst_11 {dimension_numbers = #tpu.dot_dimension_numbers<[1], [0], [0], [1], [0, 0, 1, 1], [], []>, precision = #tpu.contract_precision<fp32>} : vector<1x8xf32>, vector<8x32xf32>, vector<1x32xf32> -> vector<1x32xf32>
    %14 = arith.negf %13 : vector<1x32xf32>
    %15 = math.exp %14 : vector<1x32xf32>
    %cst_12 = arith.constant 1.000000e+00 : f32
    %16 = vector.broadcast %cst_12 : f32 to vector<1x32xf32>
    %17 = arith.addf %16, %15 : vector<1x32xf32>
    %18 = arith.divf %16, %17 : vector<1x32xf32>
    %19 = vector.shape_cast %18 : vector<1x32xf32> to vector<1x32x1xf32>
    %20 = vector.broadcast %19 : vector<1x32x1xf32> to vector<1x32x128xf32>
    %21 = arith.mulf %0, %20 : vector<1x32x128xf32>
    %c0_13 = arith.constant 0 : index
    %c0_14 = arith.constant 0 : index
    %c0_15 = arith.constant 0 : index
    %22 = vector.load %arg5[%c0_13, %c0_14, %c0_15] : memref<1x32x128xf32, #tpu.memory_space<vmem>>, vector<1x32x128xf32>
    tpu.vector_store %arg5[%c0_13, %c0_14, %c0_15], %21 {strides = array<i32>} : memref<1x32x128xf32, #tpu.memory_space<vmem>>, vector<1x32x128xf32>,
    return
  }
  func.func @transform_0(%arg0: i32) -> (i32, i32, i32) {
    %c0_i32 = arith.constant 0 : i32
    %c0_i32_0 = arith.constant 0 : i32
    %c0_i32_1 = arith.constant 0 : i32
    return %arg0, %c0_i32, %c0_i32_0 : i32, i32, i32
  }
  func.func @transform_1(%arg0: i32) -> (i32, i32) {
    %c0_i32 = arith.constant 0 : i32
    %c0_i32_0 = arith.constant 0 : i32
    %c0_i32_1 = arith.constant 0 : i32
    return %c0_i32, %c0_i32_0 : i32, i32
  }
  func.func @transform_2(%arg0: i32) -> (i32, i32) {
    %c0_i32 = arith.constant 0 : i32
    %c0_i32_0 = arith.constant 0 : i32
    %c0_i32_1 = arith.constant 0 : i32
    return %c0_i32, %c0_i32_0 : i32, i32
  }
  func.func @transform_3(%arg0: i32) -> (i32, i32) {
    %c0_i32 = arith.constant 0 : i32
    %c0_i32_0 = arith.constant 0 : i32
    %c0_i32_1 = arith.constant 0 : i32
    return %c0_i32, %c0_i32_0 : i32, i32
  }
  func.func @transform_4(%arg0: i32) -> (i32, i32, i32) {
    %c0_i32 = arith.constant 0 : i32
    %c0_i32_0 = arith.constant 0 : i32
    %c0_i32_1 = arith.constant 0 : i32
    return %arg0, %c0_i32, %c0_i32_0 : i32, i32, i32
  }
}

</mosaic_0001>

<bundles_post_ra>
// kernel: tpu_custom_call.1
= control target key start
LH: loop header
LB: loop body
LE: loop exit
PB: predicated region body
PF: predicated region fallthrough
CT: control target
= control target key end

     0   :  { %9 = vsyncpa [#allocation3], 0  ;;  %s1992_s0 = inlined_call_operand.hbm [shape: f32[2,32,128], index: 0, kind: input, shape index: {}]   ;;  %s1993_s1 = inlined_call_operand.vmem [shape: f32[32,8], index: 1, kind: input, shape index: {}]   ;;  %s1994_s2 = inlined_call_operand.vmem [shape: f32[8,32], index: 2, kind: input, shape index: {}]   ;;  %s1995_s3 = inlined_call_operand.vmem [shape: f32[1,8], index: 3, kind: input, shape index: {}]   ;;  %s1996_s4 = inlined_call_operand.hbm [shape: f32[2,32,128], index: 4, kind: output, shape index: {}]  }
   0x1   :  { %11 = vsyncpa [#allocation3 + $0x1], 0 }
   0x2   :  { %12 = vsyncpa [#allocation4], 0 }
   0x3   :  { %14 = vsyncpa [#allocation4 + $0x1], 0  ;;  %s1675_s15 = smov 0   ;;  %s1677_s16 = smov 0  }
   0x4   :  { %s1679_s17 = smov 0   ;;  %s1681_s18 = smov 0  }
   0x5 LB: > { %s1696_s19 = sadd.s32 4294967295, %s1640_s18   ;;  %s1337_s20 = sadd.s32 4294967294, %s1640_s18   ;;  %s1640_s18 = sphi %s1681_s18, %s2011_s18   ;;  %s1636_s17 = sphi %s1679_s17, %s2010_s17   ;;  %s1632_s16 = sphi %s1677_s16, %s2009_s16   ;;  %s1628_s15 = sphi %s1675_s15, %s2008_s15  }
   0x6   : > { %s1700_s21 = sadd.s32 1, %s1640_s18   ;;  %s27_s22 = sadd.s32 1, %s1636_s17 }
   0x7   : > { %s24_s23 = ssub.s32 %s1640_s18, %s1700_s21  ;;  %p34_p0 = scmp.ne.s32.totalorder %s1636_s17, %s1632_s16 }
   0x8   : > { %p25_p1 = scmp.eq.s32.totalorder %s24_s23, 0  ;;  %p35_p2 = scmp.eq.s32.totalorder %s1640_s18, 0 }
   0x9   : > { %p40_p3 = scmp.ne.s32.totalorder %s1632_s16, %s1628_s15  ;;  %p41_p4 = scmp.eq.s32.totalorder %s1696_s19, 0 }
   0xa   : > { %s1712_s24 = scalar_select %p25_p1, %s1636_s17, %s27_s22  }
   0xb   : > { %p1714_p5 = por %p35_p2, %p34_p0  ;;  %p1718_p6 = por %p41_p4, %p40_p3 }
   0xc   : > { %p127_p7 = scmp.eq.s32.totalorder %s1696_s19, 1  ;;  %p133_p8 = scmp.eq.s32.totalorder %s1337_s20, 1 }
   0xd   : > { %s2000_s26 = scalar_select %p1718_p6, 1, 0 }
   0xe   : > { %p1504_p10 = scmp.lt.s32.totalorder %s1640_s18, 2  ;;  %p1725_p11 = por %p127_p7, %p34_p0 }
   0xf   : > { %p1729_p12 = por %p133_p8, %p40_p3  ;;  %s162_s29 = sand.u32 1, %s1636_s17  }
  0x10   : > { %s2001_s27 = scalar_select %p1725_p11, 1, 0 }
  0x11   : > { %s2002_s28 = scalar_select %p1729_p12, 1, 0 }
  0x12   : > { %s1352_s30 = sshll.u32 %s1640_s18, 9  ;;  %s1340_s5 = sshll.u32 %s162_s29, 5 }
  0x13   : > { %s1738_s8 = scalar_lea.hbm %s1992_s0, %s1352_s30  ;;  %s166_s9 = scalar_lea.vmem [#allocation2], %s1340_s5 }
  0x14   : > { %s173_s10 = sshll.u32 %s166_s9, 4  ;;  %p1742_p13 = pnand %p1504_p10, %p1714_p5  ;;  %s1746_s10 = int_to_ptr.vmem [resolvable:$true] %s173_s10 }
  0x15   : > { %s1748_s12 = scalar_lea.sflag [#allocation3], %s162_s29  ;;  %s1548_s13 = scalar_lea.hbm %s1738_s8, 512 }
  0x16   : > { %p1549_p0 = scmp.ne.s32.totalorder %s1738_s8, %s1548_s13  ;;  %p1550_p1 = pneg %p1742_p13 }
  0x17   : > { %s1553_s22 = scalar_lea.hbm %s1992_s0, 1024  ;;  %p1554_p4 = scmp.lt.s32.totalorder %s1738_s8, %s1992_s0 }
  0x18   : > { %p1551_p2 = pnand %p1550_p1, %p1549_p0  ;;  %p1555_p5 = scmp.lt.s32.totalorder %s1553_s22, %s1548_s13 }
  0x1a   : > { %p1552_p3 = pneg %p1551_p2  ;;  %p1556_p7 = por %p1555_p5, %p1554_p4 }
  0x1c   : > { %p1557_p8 = pnand %p1556_p7, %p1552_p3 }
  0x1e   : > { %1560 = shalt.err (!%p1557_p8)
}
  0x1f   : > { %s1561_s29 = scalar_lea.vmem %s1746_s10, 512  ;;  %s1642_s30 = smov [#allocation2]  }
  0x20   : > { %p1562_p10 = scmp.ne.s32.totalorder %s1746_s10, %s1561_s29  ;;  %s1566_s5 = sshll.u32 %s1642_s30, 4  ;;  %s1567_s5 = int_to_ptr.vmem [resolvable:$false] %s1566_s5 }
  0x21   : > { %s1568_s6 = scalar_lea.vmem %s1567_s5, 1024  ;;  %p1569_p2 = scmp.lt.s32.totalorder %s1746_s10, %s1567_s5 }
  0x22   : > { %p1564_p9 = pnand %p1562_p10, %p1550_p1  ;;  %p1570_p12 = scmp.lt.s32.totalorder %s1568_s6, %s1561_s29 }
  0x24   : > { %p1565_p0 = pneg %p1564_p9  ;;  %p1571_p11 = por %p1570_p12, %p1569_p2 }
  0x26   : > { %p1572_p6 = pnand %p1571_p11, %p1565_p0 }
  0x28   : > { %1575 = shalt.err (!%p1572_p6)
}
  0x29   : > { %s1643_s7 = smov 128   ;;  %s1644_s9 = smov 8  }
  0x2a   : > { %1499 = dma.hbm_to_vmem [thread:$0]  (!%p1742_p13), %s1738_s8, 512, %s1746_s10, %s1748_s12, %s1643_s7, %s1643_s7, %s1644_s9  }
  0x2b   : > { %p1343_p9 = scmp.ge.s32.totalorder %s1640_s18, 1  ;;  %p181_p1 = scmp.lt.s32.totalorder %s1640_s18, 3 }
  0x2d   : > { %p182_p3 = pnand %p1343_p9, %p181_p1 }
  0x2e   : > { %s1772_s13 = sand.u32 (!%p182_p3), 1, %s1632_s16   ;;  %p2004_p6 = scmp.ne.s32.totalorder (!%p182_p3), %s2000_s26, 0 }
  0x2f   : > { %185 = sbr.rel (%p182_p3) target bundleno = 838 (0x346), region = 36  ;;  %s1344_s14 = sshll.u32 (!%p182_p3), %s1772_s13, 5 }
  0x30   : > { %s188_s20 = scalar_lea.sflag (!%p182_p3), [#allocation3], %s1772_s13  ;;  %s191_s22 = scalar_lea.vmem (!%p182_p3), [#allocation2], %s1344_s14 }
  0x34   : > { %1619 = dma.done.wait (%p2004_p6), %s188_s20, 512  }
  0x35   : > { %1621 = vsyncadd (%p2004_p6), %s188_s20, 4294966784  ;;  %v1782_v0 = vld [vmem:[%s191_s22] sm:$0xff]  ;;  %v1784_v1 = vld [vmem:[%s191_s22 + $0x8] sm:$0xff]  ;;  %v1645_v27 = vmov 0.0   ;;  %vm1646_vm0 = vmmov 0   ;;  %v250_v42 = vlaneseq  ;;  %vm261_vm1 = vcmask 130112  }
  0x36   : > { %v1786_v2 = vld [vmem:[%s191_s22 + $0x10] sm:$0xff]  ;;  %v220_v3 = vadd.f32 %v1784_v1, %v1782_v0  ;;  %v1790_v4 = vld [vmem:[%s191_s22 + $0x18] sm:$0xff]  ;;  %v242_v22 = vld [vmem:[%s1993_s1 + $0x8] sm:$0xff]  ;;  %1407 = vmatprep.subr.mxu1 %v1645_v27  ;;  %1396 = vmatprep.subr.mxu0 %v1645_v27  ;;  %vm268_vm2 = vcmask 195712   ;;  %vm275_vm3 = vcmask 261312   ;;  %vm277_vm4 = vcmask 261120  }
  0x37   : > { %v244_v17 = vld [vmem:[%s1993_s1 + $0x18] sm:$0xff]  ;;  %v243_v19 = vld [vmem:[%s1993_s1 + $0x10] sm:$0xff]  ;;  %v1818_v25 = vand.u32 4294901760, %v242_v22  ;;  %v241_v26 = vld [vmem:[%s1993_s1] sm:$0xff]  ;;  %1415 = vmatprep.mubr.msk.f32.mxu1 %vm1646_vm0, %v1645_v27  ;;  %1404 = vmatprep.mubr.msk.f32.mxu0 %vm1646_vm0, %v1645_v27  ;;  %v251_v43 = vand.u32 127, %v250_v42  ;;  %v1864_v44 = vshrl.u32 %v250_v42, 7 }
  0x38   : > { %v221_v5 = vadd.f32 %v220_v3, %v1786_v2  ;;  %v1801_v18 = vand.u32 4294901760, %v244_v17  ;;  %v1809_v21 = vand.u32 4294901760, %v243_v19  ;;  %v1831_v31 = vand.u32 4294901760, %v241_v26  ;;  %s215_s9 = scalar_lea.vmem [#allocation5], %s1344_s14  ;;  %s1353_s22 = sshll.u32 %s1696_s19, 9 }
  0x39   : > { %v1829_v30 = vsub.f32 %v242_v22, %v1818_v25  ;;  %v256_v45 = vadd.s32 4294967288, %v251_v43  ;;  %v270_v46 = vadd.s32 4294967272, %v251_v43  ;;  %v263_v47 = vadd.s32 4294967280, %v251_v43  ;;  %s1264_s20 = sshll.u32 %s215_s9, 4  ;;  %s1948_s10 = scalar_lea.hbm %s1996_s4, %s1353_s22  ;;  %s1943_s20 = int_to_ptr.vmem [resolvable:$true] %s1264_s20 }
  0x3a   : > { %v222_v6 = vadd.f32 %v221_v5, %v1790_v4  ;;  %v1807_v20 = vsub.f32 %v244_v17, %v1801_v18  ;;  %v1816_v24 = vsub.f32 %v243_v19, %v1809_v21  ;;  %1397 = vmatpush3.msra.mxu0 %v1801_v18  ;;  %v1840_v35 = vsub.f32 %v241_v26, %v1831_v31  ;;  %s1251_s14 = scalar_lea.sflag [#allocation4], %s1772_s13  ;;  %s1576_s11 = scalar_lea.vmem %s1943_s20, 512 }
  0x3b   : > { %v400_v34 = vand.u32 4294901760, %v1829_v30  ;;  %1398 = vmatprep.subr.mxu0 %v1645_v27  ;;  %v254_v50 = vsub.s32 %v251_v43, %v1864_v44  ;;  %v259_v51 = vsub.s32 %v256_v45, %v1864_v44  ;;  %v273_v52 = vsub.s32 %v270_v46, %v1864_v44  ;;  %p1577_p11 = scmp.ne.s32.totalorder %s1943_s20, %s1576_s11  ;;  %p2005_p12 = scmp.ne.s32.totalorder %s2001_s27, 0 }
  0x3c   : > { %v223_v7 = vrot.slane %v222_v6, 4  ;;  %v386_v23 = vand.u32 4294901760, %v1807_v20  ;;  %v393_v29 = vand.u32 4294901760, %v1816_v24  ;;  %1399 = vmatpush3.msra.mxu0 %v1809_v21  ;;  %v407_v38 = vand.u32 4294901760, %v1840_v35  ;;  %s1647_s19 = smov [#allocation5]  }
  0x3d   : > { %v401_v37 = vsub.f32 %v1829_v30, %v400_v34  ;;  %1400 = vmatprep.subr.mxu0 %v1645_v27  ;;  %v266_v53 = vsub.s32 %v263_v47, %v1864_v44  ;;  %vm767_vm5 = vcmask 64512   ;;  %p1578_p13 = pnand %p1577_p11, %p2005_p12  ;;  %s1580_s12 = sshll.u32 %s1647_s19, 4  ;;  %s1581_s12 = int_to_ptr.vmem [resolvable:$false] %s1580_s12 }
  0x3e   : > { %v224_v8 = vadd.f32 %v223_v7, %v222_v6  ;;  %v387_v28 = vsub.f32 %v1807_v20, %v386_v23  ;;  %v394_v33 = vsub.f32 %v1816_v24, %v393_v29  ;;  %1401 = vmatpush3.msra.mxu0 %v1818_v25  ;;  %v408_v40 = vsub.f32 %v1840_v35, %v407_v38  ;;  %s1582_s23 = scalar_lea.vmem %s1581_s12, 1024  ;;  %p1583_p5 = scmp.lt.s32.totalorder %s1943_s20, %s1581_s12 }
  0x3f   : > { %v402_v39 = vand.u32 4294901760, %v401_v37  ;;  %1402 = vmatprep.subr.mxu0 %v1645_v27  ;;  %p1579_p4 = pneg %p1578_p13  ;;  %p1584_p7 = scmp.lt.s32.totalorder %s1582_s23, %s1576_s11 }
  0x40   : > { %v225_v9 = vrot.slane %v224_v8, 2  ;;  %v388_v32 = vand.u32 4294901760, %v387_v28  ;;  %v395_v36 = vand.u32 4294901760, %v394_v33  ;;  %1403 = vmatpush3.msra.mxu0 %v1831_v31  ;;  %v409_v41 = vand.u32 4294901760, %v408_v40 }
  0x41   : > { %1418 = vmatprep.subr.mxu0 %v1645_v27  ;;  %p1585_p8 = por %p1584_p7, %p1583_p5 }
  0x42   : > { %v226_v10 = vadd.f32 %v225_v9, %v224_v8  ;;  %1408 = vmatpush3.msra.mxu1 %v388_v32  ;;  %v766_v9 = vld [vmem:[%s1994_s2] sm:$0xff] }
  0x43   : > { %1409 = vmatprep.subr.mxu1 %v1645_v27  ;;  %p1586_p10 = pnand %p1585_p8, %p1579_p4 }
  0x44   : > { %v227_v11 = vrot.slane %v226_v10, 1  ;;  %1410 = vmatpush3.msra.mxu1 %v395_v36 }
  0x45   : > { %1411 = vmatprep.subr.mxu1 %v1645_v27 }
  0x46   : > { %v228_v12 = vadd.f32 %v227_v11, %v226_v10  ;;  %1412 = vmatpush3.msra.mxu1 %v402_v39  ;;  %v802_v10 = vand.u32 4294901760, %v766_v9 }
  0x47   : > { %1413 = vmatprep.subr.mxu1 %v1645_v27 }
  0x48   : > { %v229_v13 = vmul.f32 %v228_v12, %v1782_v0  ;;  %v231_v14 = vmul.f32 %v228_v12, %v1786_v2  ;;  %v230_v15 = vmul.f32 %v228_v12, %v1784_v1  ;;  %v232_v16 = vmul.f32 %v228_v12, %v1790_v4  ;;  %1414 = vmatpush3.msra.mxu1 %v409_v41 }
  0x49   : > { %1429 = vmatprep.subr.mxu1 %v1645_v27  ;;  %v879_v11 = vsub.f32 %v766_v9, %v802_v10 }
  0x4a   : > { %233 = vadd.xlane.f32.xlu0 %v229_v13  ;;  %237 = vadd.xlane.f32.xlu1 %v231_v14 }
  0x4b   : > { %v880_v12 = vand.u32 4294901760, %v879_v11 }
  0x4d   : > { %v881_v13 = vsub.f32 %v879_v11, %v880_v12 }
  0x4e   : > { %235 = vadd.xlane.f32.xlu0 %v230_v15  ;;  %239 = vadd.xlane.f32.xlu1 %v232_v16 }
  0x4f   : > { %v882_v14 = vand.u32 4294901760, %v881_v13 }
  0xd3   : > { %v234_v48 = vpop.xlane.xlu0 %233  ;;  %v238_v49 = vpop.xlane.xlu1 %237 }
  0xd4   : > { %v255_v56 = vrot.slane %v234_v48, %v254_v50  ;;  %v267_v59 = vrot.slane %v238_v49, %v266_v53 }
  0xd7   : > { %v236_v54 = vpop.xlane.xlu0 %235  ;;  %v240_v55 = vpop.xlane.xlu1 %239 }
  0xd8   : > { %v260_v57 = vrot.slane %v236_v54, %v259_v51  ;;  %v274_v58 = vrot.slane %v240_v55, %v273_v52 }
  0xda   : > { %v262_v60 = vsel %vm261_vm1, %v260_v57, %v255_v56 }
  0xdb   : > { %v269_v61 = vsel %vm268_vm2, %v267_v59, %v262_v60 }
  0xdc   : > { %v276_v62 = vsel %vm275_vm3, %v274_v58, %v269_v61 }
  0xdd   : > { %v278_v63 = vsel %vm277_vm4, %v276_v62, 0  ;;  %v1225_v62 = vsub.s32 0, %v1864_v44 }
  0xde   : > { %v349_v3 = vand.u32 4294901760, %v278_v63 }
  0xe0   : > { %v350_v5 = vsub.f32 %v278_v63, %v349_v3  ;;  %1416 = vmatmul.mubr.f32.vlgmr.msra.gmra.mxu1 %v349_v3 }
  0xe1   : > { %1430 = vmatpush3.msra.mxu1 %v1801_v18  ;;  %1437 = vmatprep.mubr.msk.f32.mxu1 %vm1646_vm0, %v1645_v27 }
  0xe2   : > { %1431 = vmatprep.subr.mxu1 %v1645_v27  ;;  %v351_v6 = vand.u32 4294901760, %v350_v5 }
  0xe3   : > { %1432 = vmatpush3.msra.mxu1 %v1809_v21 }
  0xe4   : > { %1433 = vmatprep.subr.mxu1 %v1645_v27  ;;  %v352_v7 = vsub.f32 %v350_v5, %v351_v6 }
  0xe5   : > { %1434 = vmatpush3.msra.mxu1 %v1818_v25 }
  0xe6   : > { %1435 = vmatprep.subr.mxu1 %v1645_v27  ;;  %v353_v8 = vand.u32 4294901760, %v352_v7 }
  0xe7   : > { %1436 = vmatpush3.msra.mxu1 %v1831_v31 }
  0xe8   : > { %1438 = vmatmul.mubr.f32.vlgmr.msra.gmra.mxu1 %v351_v6  ;;  %1451 = vmatprep.subr.mxu1 %v1645_v27 }
  0xe9   : > { %1405 = vmatmul.mubr.f32.vlgmr.msra.gmra.mxu0 %v353_v8  ;;  %1452 = vmatpush3.msra.mxu1 %v1801_v18 }
  0xea   : > { %1419 = vmatpush3.msra.mxu0 %v1807_v20  ;;  %1453 = vmatprep.subr.mxu1 %v1645_v27 }
  0xeb   : > { %1420 = vmatprep.subr.mxu0 %v1645_v27  ;;  %1454 = vmatpush3.msra.mxu1 %v1809_v21  ;;  %v245_v21 = vld [vmem:[%s1995_s3] sm:$0x1] }
  0xec   : > { %1421 = vmatpush3.msra.mxu0 %v1816_v24  ;;  %1455 = vmatprep.subr.mxu1 %v1645_v27 }
  0xed   : > { %1422 = vmatprep.subr.mxu0 %v1645_v27  ;;  %1456 = vmatpush3.msra.mxu1 %v1818_v25 }
  0xee   : > { %1423 = vmatpush3.msra.mxu0 %v1829_v30  ;;  %1457 = vmatprep.subr.mxu1 %v1645_v27 }
  0xef   : > { %1424 = vmatprep.subr.mxu0 %v1645_v27  ;;  %1426 = vmatprep.mubr.msk.f32.mxu0 %vm1646_vm0, %v1645_v27 }
  0xf0   : > { %1425 = vmatpush3.msra.mxu0 %v1840_v35  ;;  %1458 = vmatpush3.msra.mxu1 %v1831_v31 }
  0xf1   : > { %1459 = vmatprep.mubr.msk.f32.mxu1 %vm1646_vm0, %v1645_v27  ;;  %1427 = vmatmul.mubr.f32.vlgmr.msra.gmra.mxu0 %v350_v5 }
  0xf2   : > { %1440 = vmatprep.subr.mxu0 %v1645_v27  ;;  %1460 = vmatmul.mubr.f32.vlgmr.msra.gmra.mxu1 %v349_v3 }
  0xf3   : > { %1441 = vmatpush3.msra.mxu0 %v386_v23  ;;  %1448 = vmatprep.mubr.msk.f32.mxu0 %vm1646_vm0, %v1645_v27 }
  0xf4   : > { %1442 = vmatprep.subr.mxu0 %v1645_v27  ;;  %1467 = vmatprep.subr.mxu1 %v1645_v27 }
  0xf5   : > { %1443 = vmatpush3.msra.mxu0 %v393_v29  ;;  %1469 = vmatprep.mubr.msk.f32.mxu1 %vm1646_vm0, %v1645_v27 }
  0xf6   : > { %1444 = vmatprep.subr.mxu0 %v1645_v27  ;;  %1468 = vmatpush3.msra.mxu1 %v882_v14 }
  0xf7   : > { %1445 = vmatpush3.msra.mxu0 %v400_v34  ;;  %1477 = vmatprep.subr.mxu1 %v1645_v27 }
  0xf8   : > { %1446 = vmatprep.subr.mxu0 %v1645_v27 }
  0xf9   : > { %1447 = vmatpush3.msra.mxu0 %v407_v38 }
  0xfa   : > { %1449 = vmatmul.mubr.f32.vlgmr.msra.gmra.mxu0 %v349_v3  ;;  %1462 = vmatprep.subr.mxu0 %v1645_v27 }
  0xfb   : > { %1464 = vmatprep.mubr.msk.f32.mxu0 %vm1646_vm0, %v1645_v27  ;;  %1463 = vmatpush3.msra.mxu0 %v802_v10 }
  0xfc   : > { %1472 = vmatprep.subr.mxu0 %v1645_v27 }
 0x1a0   : > { %v446_v15 = vpop.f32.mrf.mxu1 }
 0x1a2   : > { %v1417_v16 = vpop.f32.mrf.mxu1 }
 0x1a8   : > { %v603_v17 = vpop.f32.mrf.mxu1 }
 0x1a9   : > { %v355_v18 = vpop.f32.mrf.mxu0 }
 0x1aa   : > { %v1439_v19 = vpop.f32.mrf.mxu1  ;;  %v356_v22 = vadd.f32 %v355_v18, %v245_v21 }
 0x1ab   : > { %v1406_v20 = vpop.f32.mrf.mxu0 }
 0x1ac   : > { %v447_v25 = vadd.f32 %v446_v15, %v356_v22 }
 0x1b1   : > { %v526_v23 = vpop.f32.mrf.mxu0 }
 0x1b2   : > { %v761_v24 = vpop.f32.mrf.mxu1  ;;  %v527_v29 = vadd.f32 %v526_v23, %v447_v25 }
 0x1b3   : > { %v1428_v26 = vpop.f32.mrf.mxu0 }
 0x1b4   : > { %v1461_v28 = vpop.f32.mrf.mxu1  ;;  %v604_v30 = vadd.f32 %v603_v17, %v527_v29 }
 0x1ba   : > { %v686_v31 = vpop.f32.mrf.mxu0 }
 0x1bb   : > { %v687_v32 = vadd.f32 %v686_v31, %v604_v30 }
 0x1bc   : > { %v1450_v33 = vpop.f32.mrf.mxu0 }
 0x1bd   : > { %v762_v34 = vadd.f32 %v761_v24, %v687_v32 }
 0x1bf   : > { %v765_v35 = vmax.f32 %v762_v34, 0.0 }
 0x1c1   : > { %v769_v36 = vsel %vm767_vm5, %v765_v35, 0 }
 0x1c2   : > { %v837_v37 = vand.u32 4294901760, %v769_v36 }
 0x1c4   : > { %v838_v38 = vsub.f32 %v769_v36, %v837_v37  ;;  %1470 = vmatmul.mubr.f32.vlgmr.msra.gmra.mxu1 %v837_v37 }
 0x1c5   : > { %1478 = vmatpush3.msra.mxu1 %v802_v10  ;;  %1479 = vmatprep.mubr.msk.f32.mxu1 %vm1646_vm0, %v1645_v27 }
 0x1c6   : > { %v839_v39 = vand.u32 4294901760, %v838_v38  ;;  %1487 = vmatprep.subr.mxu1 %v1645_v27 }
 0x1c8   : > { %1480 = vmatmul.mubr.f32.vlgmr.msra.gmra.mxu1 %v839_v39  ;;  %v840_v40 = vsub.f32 %v838_v38, %v839_v39 }
 0x1c9   : > { %1488 = vmatpush3.msra.mxu1 %v802_v10  ;;  %1489 = vmatprep.mubr.msk.f32.mxu1 %vm1646_vm0, %v1645_v27 }
 0x1ca   : > { %v841_v41 = vand.u32 4294901760, %v840_v40 }
 0x1cc   : > { %1465 = vmatmul.mubr.f32.vlgmr.msra.gmra.mxu0 %v841_v41  ;;  %1490 = vmatmul.mubr.f32.vlgmr.msra.gmra.mxu1 %v837_v37 }
 0x1cd   : > { %1473 = vmatpush3.msra.mxu0 %v879_v11  ;;  %1474 = vmatprep.mubr.msk.f32.mxu0 %vm1646_vm0, %v1645_v27 }
 0x1ce   : > { %1482 = vmatprep.subr.mxu0 %v1645_v27 }
 0x1d0   : > { %1475 = vmatmul.mubr.f32.vlgmr.msra.gmra.mxu0 %v838_v38 }
 0x1d1   : > { %1483 = vmatpush3.msra.mxu0 %v880_v12  ;;  %1484 = vmatprep.mubr.msk.f32.mxu0 %vm1646_vm0, %v1645_v27 }
 0x1d4   : > { %1485 = vmatmul.mubr.f32.vlgmr.msra.gmra.mxu0 %v837_v37 }
 0x284   : > { %v919_v42 = vpop.f32.mrf.mxu1 }
 0x286   : > { %v1471_v43 = vpop.f32.mrf.mxu1 }
 0x288   : > { %v1067_v45 = vpop.f32.mrf.mxu1 }
 0x28a   : > { %v1481_v46 = vpop.f32.mrf.mxu1 }
 0x28c   : > { %v843_v47 = vpop.f32.mrf.mxu0  ;;  %v1213_v48 = vpop.f32.mrf.mxu1 }
 0x28d   : > { %v920_v51 = vadd.f32 %v919_v42, %v843_v47 }
 0x28e   : > { %v1466_v49 = vpop.f32.mrf.mxu0  ;;  %v1491_v50 = vpop.f32.mrf.mxu1 }
 0x290   : > { %v993_v52 = vpop.f32.mrf.mxu0 }
 0x291   : > { %v994_v53 = vadd.f32 %v993_v52, %v920_v51 }
 0x292   : > { %v1476_v54 = vpop.f32.mrf.mxu0 }
 0x293   : > { %v1068_v55 = vadd.f32 %v1067_v45, %v994_v53 }
 0x294   : > { %v1141_v56 = vpop.f32.mrf.mxu0 }
 0x295   : > { %v1142_v57 = vadd.f32 %v1141_v56, %v1068_v55 }
 0x296   : > { %v1486_v58 = vpop.f32.mrf.mxu0 }
 0x297   : > { %v1214_v59 = vadd.f32 %v1213_v48, %v1142_v57 }
 0x299   : > { %v1346_v60 = vmul.f32 -1.442695, %v1214_v59 }
 0x29b   : > { %1544 = vpow2.f32 %v1346_v60 }
 0x2a8   : > { %v1545_v27 = vpop.eup %1544 }
 0x2a9   : > { %v1220_v61 = vadd.f32 1.0, %v1545_v27 }
 0x2ab   : > { %1546 = vrcp.f32 %v1220_v61 }
 0x2b8   : > { %v1547_v63 = vpop.eup %1546 }
 0x2b9   : > { %v1226_v3 = vrot.slane %v1547_v63, %v1225_v62 }
 0x2bb   : > { %1232 = vbcast.lane.b32.xlu1 %v1226_v3, 264  ;;  %1228 = vbcast.lane.b32.xlu0 %v1226_v3, 256 }
 0x2bf   : > { %1236 = vbcast.lane.b32.xlu1 %v1226_v3, 272 }
 0x2c3   : > { %1240 = vbcast.lane.b32.xlu1 %v1226_v3, 280 }
 0x32d   : > { %v1233_v5 = vpop.permute.xlu1 %1232  ;;  %v1229_v6 = vpop.permute.xlu0 %1228 }
 0x32e   : > { %v1243_v7 = vmul.f32 %v1233_v5, %v1784_v1  ;;  %v1242_v8 = vmul.f32 %v1229_v6, %v1782_v0 }
 0x330   : > { %1247 = vst [vmem:[%s215_s9 + $0x8] sm:$0xff] %v1243_v7  ;;  %1246 = vst [vmem:[%s215_s9] sm:$0xff] %v1242_v8 }
 0x331   : > { %v1237_v44 = vpop.permute.xlu1 %1236 }
 0x332   : > { %v1244_v9 = vmul.f32 %v1237_v44, %v1786_v2 }
 0x334   : > { %1248 = vst [vmem:[%s215_s9 + $0x10] sm:$0xff] %v1244_v9 }
 0x335   : > { %v1241_v10 = vpop.permute.xlu1 %1240 }
 0x336   : > { %v1245_v0 = vmul.f32 %v1241_v10, %v1790_v4 }
 0x338   : > { %1249 = vst [vmem:[%s215_s9 + $0x18] sm:$0xff] %v1245_v0 }
 0x339   : > { %1589 = shalt.err (!%p1586_p10)
}
 0x33a   : > { %s1590_s25 = scalar_lea.hbm %s1948_s10, 512  ;;  %s1594_s5 = scalar_lea.hbm %s1996_s4, 1024 }
 0x33b   : > { %p1591_p0 = scmp.ne.s32.totalorder %s1948_s10, %s1590_s25  ;;  %p1595_p1 = scmp.lt.s32.totalorder %s1948_s10, %s1996_s4 }
 0x33c   : > { %p1596_p3 = scmp.lt.s32.totalorder %s1594_s5, %s1590_s25 }
 0x33d   : > { %p1592_p2 = pnand %p1591_p0, %p2005_p12 }
 0x33e   : > { %p1597_p6 = por %p1596_p3, %p1595_p1 }
 0x33f   : > { %p1593_p9 = pneg %p1592_p2 }
 0x341   : > { %p1598_p11 = pnand %p1597_p6, %p1593_p9 }
 0x343   : > { %1601 = shalt.err (!%p1598_p11)
}
 0x344   : > { %s1648_s9 = smov 128   ;;  %s1649_s22 = smov 8  }
 0x345   : > { %1494 = dma.vmem_to_hbm [thread:$0]  (%p2005_p12), %s1943_s20, 512, %s1948_s10, %s1251_s14, %s1648_s9, %s1648_s9, %s1649_s22  }
 0x346 PF: > { %s1279_s26 = sand.u32 1, %s1628_s15   ;;  %p2006_p13 = scmp.ne.s32.totalorder %s2002_s28, 0 }
 0x347   : > { %p2007_p4 = scmp.ge.s32.totalorder %s1640_s18, 2  ;;  %s1280_s8 = scalar_lea.sflag [#allocation4], %s1279_s26 }
 0x349   : > { %p1501_p5 = pnand %p2007_p4, %p2006_p13 }
 0x34b   : > { %p1502_p7 = pneg %p1501_p5 }
 0x34d   : > { %1623 = dma.done.wait (%p1502_p7), %s1280_s8, 512  }
 0x34e   : > { %1625 = vsyncadd (%p1502_p7), %s1280_s8, 4294966784  ;;  %p17_p8 = scmp.ge.s32.totalorder %s1700_s21, 4   ;;  %s2008_s15 = smov %s1632_s16 }
 0x34f   : > { %s2009_s16 = smov %s1636_s17  ;;  %s2010_s17 = smov %s1712_s24 }
 0x350   : > { %s2011_s18 = smov %s1700_s21  ;;  %19 = sbr.rel (!%p17_p8) target bundleno = 5 (0x5), region = 81 }
 0x355   :  { %1285 = vsyncpa [#allocation3], 1 }
 0x356   :  { %1287 = vsyncpa [#allocation3 + $0x1], 1 }
 0x357   :  { %1288 = vsyncpa [#allocation4], 1 }
 0x358   :  { %1290 = vsyncpa [#allocation4 + $0x1], 1 }

</bundles_post_ra>
